<compile_context>
chip_gen: v6e
topology: v6e:2x2x1
jax: 0.10.0
libtpu: 0.0.40
codegen_flags: <defaults>
</compile_context>

<pallas_src>
import numpy as np

import jax
import jax.numpy as jnp
from jax.experimental import pallas as pl
from jax.experimental.pallas import tpu as pltpu


_LANE = 128                       # lanes of the flat view (multiple of 128 and of 4)
_TARGET_BLOCK_BYTES = 4 << 20     # ~4 MiB per block buffer
_MIN_KERNEL_ROWS = 128            # below this (64 KiB f32) plain jnp wins outright
_VMEM_LIMIT_BYTES = 32 << 20      # 4 buffers x 4 MiB + lo/hi rows, fits every gen


def _round_up(x, m):
    return ((x + m - 1) // m) * m


def _clip_boxes_kernel(x_ref, lo_ref, hi_ref, out_ref):
    # (ts, 128) tile clamped against (1, 128) broadcast rows: 2 VPU ops/vreg.
    out_ref[...] = jnp.minimum(jnp.maximum(x_ref[...], lo_ref[...]), hi_ref[...])


def _clip_boxes_jnp(boxes, width, height):
    # Fused single-pass fallback for tiny / lane-unaligned inputs.
    lo = jnp.asarray([0.0, 0.0, -np.inf, -np.inf], dtype=boxes.dtype)
    hi = jnp.asarray([np.inf, np.inf, width, height], dtype=boxes.dtype)
    return jnp.minimum(jnp.maximum(boxes, lo), hi)


def clip_boxes(boxes, img):
    """ClipBoxes.forward: boxes [B, N, 4], img [B, C, H, W] -> clipped [B, N, 4]."""
    B, N, C = boxes.shape
    assert C == 4
    height = float(img.shape[2])
    width = float(img.shape[3])

    M4 = B * N * 4
    itemsize = boxes.dtype.itemsize

    # Tiny or lane-unaligned inputs: one fused XLA elementwise op (roofline
    # anyway, and avoids pallas_call launch + pad/slice extra HBM passes).
    if (M4 % _LANE != 0) or (M4 // _LANE < _MIN_KERNEL_ROWS):
        return _clip_boxes_jnp(boxes, width, height)

    rows = M4 // _LANE
    x2d = boxes.reshape(rows, _LANE)   # contiguous reshape: no HBM copy

    # Per-lane clamp bounds.  Flat index f = ((b*N + n)*4 + c); since the lane
    # width is a multiple of 4, lane % 4 == c for every element.
    coord = np.arange(_LANE) % 4
    lo_row = np.where(coord < 2, 0.0, -np.inf).reshape(1, _LANE)
    hi_row = np.where(coord == 2, width,
                      np.where(coord == 3, height, np.inf)).reshape(1, _LANE)
    lo = jnp.asarray(lo_row, dtype=boxes.dtype)
    hi = jnp.asarray(hi_row, dtype=boxes.dtype)

    # ~4 MiB blocks (dtype-aware), rows multiple of 32 (safe sublane tiling
    # for f32/bf16/int8).  Always >= 2 grid steps so both v7x TensorCores
    # participate; the last block may be ragged (Pallas masks it).
    max_rows = max(32, (_TARGET_BLOCK_BYTES // (_LANE * itemsize)) // 32 * 32)
    ts = min(max_rows, _round_up(pl.cdiv(rows, 2), 32))
    grid = (pl.cdiv(rows, ts),)

    out2d = pl.pallas_call(
        _clip_boxes_kernel,
        out_shape=jax.ShapeDtypeStruct((rows, _LANE), boxes.dtype),
        grid=grid,
        in_specs=[
            pl.BlockSpec((ts, _LANE), lambda i: (i, 0)),
            pl.BlockSpec((1, _LANE), lambda i: (0, 0)),
            pl.BlockSpec((1, _LANE), lambda i: (0, 0)),
        ],
        out_specs=pl.BlockSpec((ts, _LANE), lambda i: (i, 0)),
        input_output_aliases={0: 0},
        compiler_params=pltpu.CompilerParams(
            dimension_semantics=("parallel",),
            vmem_limit_bytes=_VMEM_LIMIT_BYTES,
        ),
        cost_estimate=pl.CostEstimate(
            flops=2 * M4,
            transcendentals=0,
            bytes_accessed=2 * M4 * itemsize,
        ),
    )(x2d, lo, hi)

    return out2d.reshape(B, N, 4)


def _clip_boxes_ref(boxes, img):
    height = float(img.shape[2])
    width = float(img.shape[3])
    x1 = jnp.maximum(boxes[:, :, 0], 0.0)
    y1 = jnp.maximum(boxes[:, :, 1], 0.0)
    x2 = jnp.minimum(boxes[:, :, 2], width)
    y2 = jnp.minimum(boxes[:, :, 3], height)
    return jnp.stack([x1, y1, x2, y2], axis=2)


if __name__ == "__main__":
    key = jax.random.PRNGKey(0)
    k1, k2 = jax.random.split(key)

    # Case 1: small shape (matches the module's typical use) -> fused jnp path.
    B1, N1 = 2, 128
    img1 = jnp.zeros((B1, 3, 64, 96), jnp.float32)      # height=64, width=96
    boxes1 = jax.random.uniform(k1, (B1, N1, 4), jnp.float32, -40.0, 140.0)
    out1 = jax.block_until_ready(clip_boxes(boxes1, img1))
    ref1 = _clip_boxes_ref(boxes1, img1)
    assert out1.shape == (B1, N1, 4) and out1.dtype == boxes1.dtype
    assert jnp.allclose(out1, ref1, atol=1e-6, rtol=1e-6)

    # Case 2: larger box count -> exercises the Pallas kernel path (2 grid steps).
    B2, N2 = 2, 4096
    img2 = jnp.zeros((B2, 3, 80, 112), jnp.float32)      # height=80, width=112
    boxes2 = jax.random.uniform(k2, (B2, N2, 4), jnp.float32, -60.0, 200.0)
    out2 = jax.block_until_ready(clip_boxes(boxes2, img2))
    ref2 = _clip_boxes_ref(boxes2, img2)
    assert out2.shape == (B2, N2, 4) and out2.dtype == boxes2.dtype
    assert jnp.allclose(out2, ref2, atol=1e-6, rtol=1e-6)

    print("KERNEL_OK")
</pallas_src>

<mosaic_0001>
module attributes {stable_mosaic.version = 11 : i64} {
  func.func @_clip_boxes_kernel(%arg0: i32, %arg1: memref<128x128xf32, #tpu.memory_space<vmem>>, %arg2: memref<1x128xf32, #tpu.memory_space<vmem>>, %arg3: memref<1x128xf32, #tpu.memory_space<vmem>>, %arg4: memref<128x128xf32, #tpu.memory_space<vmem>>) attributes {dimension_semantics = [#tpu.dimension_semantics<parallel>], iteration_bounds = array<i64: 2>, scalar_prefetch = 0 : i64, scratch_operands = 0 : i64, tpu.core_type = #tpu.core_type<tc>, window_params = [{transform_indices = @transform_0, window_bounds = array<i64: 128, 128>}, {pipeline_mode = #tpu.pipeline_mode<synchronous>, transform_indices = @transform_1, window_bounds = array<i64: 1, 128>}, {pipeline_mode = #tpu.pipeline_mode<synchronous>, transform_indices = @transform_2, window_bounds = array<i64: 1, 128>}, {transform_indices = @transform_3, window_bounds = array<i64: 128, 128>}]} {
    %c0 = arith.constant 0 : index
    %c0_0 = arith.constant 0 : index
    %0 = vector.load %arg1[%c0, %c0_0] : memref<128x128xf32, #tpu.memory_space<vmem>>, vector<128x128xf32>
    %c0_1 = arith.constant 0 : index
    %c0_2 = arith.constant 0 : index
    %1 = vector.load %arg2[%c0_1, %c0_2] : memref<1x128xf32, #tpu.memory_space<vmem>>, vector<1x128xf32>
    %2 = vector.broadcast %1 : vector<1x128xf32> to vector<128x128xf32>
    %3 = arith.maximumf %0, %2 : vector<128x128xf32>
    %c0_3 = arith.constant 0 : index
    %c0_4 = arith.constant 0 : index
    %4 = vector.load %arg3[%c0_3, %c0_4] : memref<1x128xf32, #tpu.memory_space<vmem>>, vector<1x128xf32>
    %5 = vector.broadcast %4 : vector<1x128xf32> to vector<128x128xf32>
    %6 = arith.minimumf %3, %5 : vector<128x128xf32>
    %c0_5 = arith.constant 0 : index
    %c0_6 = arith.constant 0 : index
    %7 = vector.load %arg4[%c0_5, %c0_6] : memref<128x128xf32, #tpu.memory_space<vmem>>, vector<128x128xf32>
    tpu.vector_store %arg4[%c0_5, %c0_6], %6 {strides = array<i32>} : memref<128x128xf32, #tpu.memory_space<vmem>>, vector<128x128xf32>,
    return
  }
  func.func @transform_0(%arg0: i32) -> (i32, i32) {
    %c0_i32 = arith.constant 0 : i32
    %c0_i32_0 = arith.constant 0 : i32
    return %arg0, %c0_i32 : i32, i32
  }
  func.func @transform_1(%arg0: i32) -> (i32, i32) {
    %c0_i32 = arith.constant 0 : i32
    %c0_i32_0 = arith.constant 0 : i32
    %c0_i32_1 = arith.constant 0 : i32
    return %c0_i32, %c0_i32_0 : i32, i32
  }
  func.func @transform_2(%arg0: i32) -> (i32, i32) {
    %c0_i32 = arith.constant 0 : i32
    %c0_i32_0 = arith.constant 0 : i32
    %c0_i32_1 = arith.constant 0 : i32
    return %c0_i32, %c0_i32_0 : i32, i32
  }
  func.func @transform_3(%arg0: i32) -> (i32, i32) {
    %c0_i32 = arith.constant 0 : i32
    %c0_i32_0 = arith.constant 0 : i32
    return %arg0, %c0_i32 : i32, i32
  }
}

</mosaic_0001>

<bundles_post_ra>
// kernel: tpu_custom_call.1
= control target key start
LH: loop header
LB: loop body
LE: loop exit
PB: predicated region body
PF: predicated region fallthrough
CT: control target
= control target key end

     0   :  { %8 = vsyncpa [#allocation3], 0  ;;  %s781_s0 = inlined_call_operand.hbm [shape: f32[256,128], index: 0, kind: input, shape index: {}, may-alias: {0,3}]   ;;  %s782_s1 = inlined_call_operand.vmem [shape: f32[1,128], index: 1, kind: input, shape index: {}]   ;;  %s783_s2 = inlined_call_operand.vmem [shape: f32[1,128], index: 2, kind: input, shape index: {}]   ;;  %s784_s3 = inlined_call_operand.hbm [shape: f32[256,128], index: 3, kind: output, shape index: {}, may-alias: {0,3}]  }
   0x1   :  { %10 = vsyncpa [#allocation3 + $0x1], 0 }
   0x2   :  { %11 = vsyncpa [#allocation4], 0 }
   0x3   :  { %13 = vsyncpa [#allocation4 + $0x1], 0  ;;  %s544_s12 = smov 0   ;;  %s546_s13 = smov 0  }
   0x4   :  { %s548_s14 = smov 0   ;;  %s550_s15 = smov 0  }
   0x5 LB: > { %s565_s16 = sadd.s32 4294967295, %s516_s15   ;;  %s356_s17 = sadd.s32 4294967294, %s516_s15   ;;  %s516_s15 = sphi %s550_s15, %s799_s15   ;;  %s512_s14 = sphi %s548_s14, %s798_s14   ;;  %s508_s13 = sphi %s546_s13, %s797_s13   ;;  %s504_s12 = sphi %s544_s12, %s796_s12  }
   0x6   : > { %s569_s18 = sadd.s32 1, %s516_s15   ;;  %s26_s19 = sadd.s32 1, %s512_s14 }
   0x7   : > { %s23_s20 = ssub.s32 %s516_s15, %s569_s18  ;;  %p33_p0 = scmp.ne.s32.totalorder %s512_s14, %s508_s13 }
   0x8   : > { %p24_p1 = scmp.eq.s32.totalorder %s23_s20, 0  ;;  %p34_p2 = scmp.eq.s32.totalorder %s516_s15, 0 }
   0x9   : > { %p39_p3 = scmp.ne.s32.totalorder %s508_s13, %s504_s12  ;;  %p40_p4 = scmp.eq.s32.totalorder %s565_s16, 0 }
   0xa   : > { %s581_s21 = scalar_select %p24_p1, %s512_s14, %s26_s19  }
   0xb   : > { %p583_p5 = por %p34_p2, %p33_p0  ;;  %p587_p6 = por %p40_p4, %p39_p3 }
   0xc   : > { %p105_p7 = scmp.eq.s32.totalorder %s565_s16, 1  ;;  %p111_p8 = scmp.eq.s32.totalorder %s356_s17, 1 }
   0xd   : > { %s788_s23 = scalar_select %p587_p6, 1, 0 }
   0xe   : > { %p386_p10 = scmp.lt.s32.totalorder %s516_s15, 2  ;;  %p594_p11 = por %p105_p7, %p33_p0 }
   0xf   : > { %p598_p12 = por %p111_p8, %p39_p3  ;;  %s137_s26 = sand.u32 1, %s512_s14  }
  0x10   : > { %s789_s24 = scalar_select %p594_p11, 1, 0 }
  0x11   : > { %s790_s25 = scalar_select %p598_p12, 1, 0 }
  0x12   : > { %s372_s27 = sshll.u32 %s516_s15, 11  ;;  %s359_s28 = sshll.u32 %s137_s26, 7 }
  0x13   : > { %s607_s4 = scalar_lea.hbm %s781_s0, %s372_s27  ;;  %s141_s5 = scalar_lea.vmem [#allocation2], %s359_s28 }
  0x14   : > { %s148_s6 = sshll.u32 %s141_s5, 4  ;;  %p611_p13 = pnand %p386_p10, %p583_p5  ;;  %s615_s6 = int_to_ptr.vmem [resolvable:$true] %s148_s6 }
  0x15   : > { %s617_s8 = scalar_lea.sflag [#allocation3], %s137_s26  ;;  %s424_s9 = scalar_lea.hbm %s607_s4, 2048 }
  0x16   : > { %p425_p0 = scmp.ne.s32.totalorder %s607_s4, %s424_s9  ;;  %p426_p1 = pneg %p611_p13 }
  0x17   : > { %s429_s17 = scalar_lea.hbm %s781_s0, 4096  ;;  %p430_p4 = scmp.lt.s32.totalorder %s607_s4, %s781_s0 }
  0x18   : > { %p427_p2 = pnand %p426_p1, %p425_p0  ;;  %p431_p5 = scmp.lt.s32.totalorder %s429_s17, %s424_s9 }
  0x1a   : > { %p428_p3 = pneg %p427_p2  ;;  %p432_p7 = por %p431_p5, %p430_p4 }
  0x1c   : > { %p433_p8 = pnand %p432_p7, %p428_p3 }
  0x1e   : > { %436 = shalt.err (!%p433_p8)
}
  0x1f   : > { %s437_s22 = scalar_lea.vmem %s615_s6, 2048  ;;  %s518_s26 = smov [#allocation2]  }
  0x20   : > { %p438_p10 = scmp.ne.s32.totalorder %s615_s6, %s437_s22  ;;  %s442_s27 = sshll.u32 %s518_s26, 4  ;;  %s443_s27 = int_to_ptr.vmem [resolvable:$false] %s442_s27 }
  0x21   : > { %s444_s28 = scalar_lea.vmem %s443_s27, 4096  ;;  %p445_p2 = scmp.lt.s32.totalorder %s615_s6, %s443_s27 }
  0x22   : > { %p440_p9 = pnand %p438_p10, %p426_p1  ;;  %p446_p12 = scmp.lt.s32.totalorder %s444_s28, %s437_s22 }
  0x24   : > { %p441_p0 = pneg %p440_p9  ;;  %p447_p11 = por %p446_p12, %p445_p2 }
  0x26   : > { %p448_p6 = pnand %p447_p11, %p441_p0 }
  0x28   : > { %451 = shalt.err (!%p448_p6)
}
  0x29   : > { %s519_s29 = smov 128   ;;  %s520_s30 = smov 8  }
  0x2a   : > { %381 = dma.hbm_to_vmem [thread:$0]  (!%p611_p13), %s607_s4, 2048, %s615_s6, %s617_s8, %s519_s29, %s519_s29, %s520_s30  }
  0x2b   : > { %p362_p9 = scmp.ge.s32.totalorder %s516_s15, 1  ;;  %p156_p1 = scmp.lt.s32.totalorder %s516_s15, 3 }
  0x2d   : > { %p157_p3 = pnand %p362_p9, %p156_p1 }
  0x2e   : > { %s641_s5 = sand.u32 (!%p157_p3), 1, %s508_s13   ;;  %p792_p6 = scmp.ne.s32.totalorder (!%p157_p3), %s788_s23, 0 }
  0x2f   : > { %160 = sbr.rel (%p157_p3) target bundleno = 81 (0x51), region = 32  ;;  %s363_s9 = sshll.u32 (!%p157_p3), %s641_s5, 7 }
  0x30   : > { %s163_s10 = scalar_lea.sflag (!%p157_p3), [#allocation3], %s641_s5  ;;  %s647_s11 = scalar_lea.vmem (!%p157_p3), [#allocation2], %s363_s9 }
  0x34   : > { %495 = dma.done.wait (%p792_p6), %s163_s10, 2048  }
  0x35   : > { %497 = vsyncadd (%p792_p6), %s163_s10, 4294965248  ;;  %v191_v0 = vld [vmem:[%s647_s11] sm:$0xff]  ;;  %v192_v4 = vld [vmem:[%s647_s11 + $0x8] sm:$0xff]  ;;  %s690_s23 = scalar_lea.vmem [#allocation5], %s363_s9  ;;  %s373_s17 = sshll.u32 %s565_s16, 11 }
  0x36   : > { %v657_v1 = vld [vmem:[%s782_s1] ss:$0 sm:$0xff]  ;;  %v193_v5 = vld [vmem:[%s647_s11 + $0x10] sm:$0xff]  ;;  %v194_v6 = vld [vmem:[%s647_s11 + $0x18] sm:$0xff]  ;;  %s283_s19 = sshll.u32 %s690_s23, 4  ;;  %s728_s22 = scalar_lea.hbm %s784_s3, %s373_s17  ;;  %s730_s19 = int_to_ptr.vmem [resolvable:$true] %s283_s19 }
  0x37   : > { %v662_v2 = vld [vmem:[%s783_s2] ss:$0 sm:$0xff]  ;;  %v214_v3 = vmax.f32 %v191_v0, %v657_v1  ;;  %v215_v7 = vmax.f32 %v192_v4, %v657_v1  ;;  %v216_v8 = vmax.f32 %v193_v5, %v657_v1  ;;  %v217_v9 = vmax.f32 %v194_v6, %v657_v1  ;;  %v196_v11 = vld [vmem:[%s647_s11 + $0x28] sm:$0xff]  ;;  %v197_v12 = vld [vmem:[%s647_s11 + $0x30] sm:$0xff]  ;;  %s270_s26 = scalar_lea.sflag [#allocation4], %s641_s5  ;;  %s452_s27 = scalar_lea.vmem %s730_s19, 2048 }
  0x38   : > { %v195_v10 = vld [vmem:[%s647_s11 + $0x20] sm:$0xff]  ;;  %v219_v15 = vmax.f32 %v196_v11, %v657_v1  ;;  %v220_v16 = vmax.f32 %v197_v12, %v657_v1  ;;  %v198_v17 = vld [vmem:[%s647_s11 + $0x38] sm:$0xff]  ;;  %v200_v19 = vld [vmem:[%s647_s11 + $0x48] sm:$0xff]  ;;  %p453_p11 = scmp.ne.s32.totalorder %s730_s19, %s452_s27  ;;  %p793_p12 = scmp.ne.s32.totalorder %s789_s24, 0 }
  0x39   : > { %v237_v13 = vmin.f32 %v214_v3, %v662_v2  ;;  %v218_v14 = vmax.f32 %v195_v10, %v657_v1  ;;  %v199_v18 = vld [vmem:[%s647_s11 + $0x40] sm:$0xff]  ;;  %v238_v20 = vmin.f32 %v215_v7, %v662_v2  ;;  %v239_v21 = vmin.f32 %v216_v8, %v662_v2  ;;  %v201_v24 = vld [vmem:[%s647_s11 + $0x50] sm:$0xff]  ;;  %v202_v25 = vld [vmem:[%s647_s11 + $0x58] sm:$0xff]  ;;  %s521_s28 = smov [#allocation5]  }
  0x3a   : > { %v240_v22 = vmin.f32 %v217_v9, %v662_v2  ;;  %v221_v23 = vmax.f32 %v198_v17, %v657_v1  ;;  %v203_v26 = vld [vmem:[%s647_s11 + $0x60] sm:$0xff]  ;;  %v242_v28 = vmin.f32 %v219_v15, %v662_v2  ;;  %v243_v29 = vmin.f32 %v220_v16, %v662_v2  ;;  %v204_v31 = vld [vmem:[%s647_s11 + $0x68] sm:$0xff]  ;;  %v205_v32 = vld [vmem:[%s647_s11 + $0x70] sm:$0xff]  ;;  %p454_p13 = pnand %p453_p11, %p793_p12  ;;  %s456_s29 = sshll.u32 %s521_s28, 4  ;;  %s457_s29 = int_to_ptr.vmem [resolvable:$false] %s456_s29 }
  0x3b   : > { %253 = vst [vmem:[%s690_s23] sm:$0xff] %v237_v13  ;;  %v241_v27 = vmin.f32 %v218_v14, %v662_v2  ;;  %v222_v30 = vmax.f32 %v199_v18, %v657_v1  ;;  %v206_v33 = vld [vmem:[%s647_s11 + $0x78] sm:$0xff]  ;;  %254 = vst [vmem:[%s690_s23 + $0x8] sm:$0xff] %v238_v20  ;;  %v223_v35 = vmax.f32 %v200_v19, %v657_v1  ;;  %s458_s30 = scalar_lea.vmem %s457_s29, 4096  ;;  %p459_p5 = scmp.lt.s32.totalorder %s730_s19, %s457_s29 }
  0x3c   : > { %255 = vst [vmem:[%s690_s23 + $0x10] sm:$0xff] %v239_v21  ;;  %256 = vst [vmem:[%s690_s23 + $0x18] sm:$0xff] %v240_v22  ;;  %v244_v34 = vmin.f32 %v221_v23, %v662_v2  ;;  %v224_v36 = vmax.f32 %v201_v24, %v657_v1  ;;  %v225_v37 = vmax.f32 %v202_v25, %v657_v1  ;;  %p455_p4 = pneg %p454_p13  ;;  %p460_p7 = scmp.lt.s32.totalorder %s458_s30, %s452_s27 }
  0x3d   : > { %257 = vst [vmem:[%s690_s23 + $0x20] sm:$0xff] %v241_v27  ;;  %258 = vst [vmem:[%s690_s23 + $0x28] sm:$0xff] %v242_v28  ;;  %v245_v38 = vmin.f32 %v222_v30, %v662_v2  ;;  %v226_v39 = vmax.f32 %v203_v26, %v657_v1  ;;  %v227_v40 = vmax.f32 %v204_v31, %v657_v1 }
  0x3e   : > { %259 = vst [vmem:[%s690_s23 + $0x30] sm:$0xff] %v243_v29  ;;  %v228_v41 = vmax.f32 %v205_v32, %v657_v1  ;;  %260 = vst [vmem:[%s690_s23 + $0x38] sm:$0xff] %v244_v34  ;;  %v246_v42 = vmin.f32 %v223_v35, %v662_v2  ;;  %v247_v43 = vmin.f32 %v224_v36, %v662_v2  ;;  %p461_p8 = por %p460_p7, %p459_p5 }
  0x3f   : > { %v248_v44 = vmin.f32 %v225_v37, %v662_v2  ;;  %v229_v45 = vmax.f32 %v206_v33, %v657_v1  ;;  %261 = vst [vmem:[%s690_s23 + $0x40] sm:$0xff] %v245_v38  ;;  %v249_v46 = vmin.f32 %v226_v39, %v662_v2  ;;  %v250_v47 = vmin.f32 %v227_v40, %v662_v2 }
  0x40   : > { %v251_v48 = vmin.f32 %v228_v41, %v662_v2  ;;  %262 = vst [vmem:[%s690_s23 + $0x48] sm:$0xff] %v246_v42  ;;  %263 = vst [vmem:[%s690_s23 + $0x50] sm:$0xff] %v247_v43  ;;  %p462_p10 = pnand %p461_p8, %p455_p4 }
  0x41   : > { %264 = vst [vmem:[%s690_s23 + $0x58] sm:$0xff] %v248_v44  ;;  %v252_v49 = vmin.f32 %v229_v45, %v662_v2  ;;  %265 = vst [vmem:[%s690_s23 + $0x60] sm:$0xff] %v249_v46 }
  0x42   : > { %266 = vst [vmem:[%s690_s23 + $0x68] sm:$0xff] %v250_v47  ;;  %267 = vst [vmem:[%s690_s23 + $0x70] sm:$0xff] %v251_v48 }
  0x43   : > { %268 = vst [vmem:[%s690_s23 + $0x78] sm:$0xff] %v252_v49 }
  0x44   : > { %465 = shalt.err (!%p462_p10)
}
  0x45   : > { %s466_s9 = scalar_lea.hbm %s728_s22, 2048  ;;  %s470_s4 = scalar_lea.hbm %s784_s3, 4096 }
  0x46   : > { %p467_p0 = scmp.ne.s32.totalorder %s728_s22, %s466_s9  ;;  %p471_p1 = scmp.lt.s32.totalorder %s728_s22, %s784_s3 }
  0x47   : > { %p472_p3 = scmp.lt.s32.totalorder %s470_s4, %s466_s9 }
  0x48   : > { %p468_p2 = pnand %p467_p0, %p793_p12 }
  0x49   : > { %p473_p6 = por %p472_p3, %p471_p1 }
  0x4a   : > { %p469_p9 = pneg %p468_p2 }
  0x4c   : > { %p474_p11 = pnand %p473_p6, %p469_p9 }
  0x4e   : > { %477 = shalt.err (!%p474_p11)
}
  0x4f   : > { %s522_s8 = smov 128   ;;  %s523_s23 = smov 8  }
  0x50   : > { %376 = dma.vmem_to_hbm [thread:$0]  (%p793_p12), %s730_s19, 2048, %s728_s22, %s270_s26, %s522_s8, %s522_s8, %s523_s23  }
  0x51 PF: > { %s298_s17 = sand.u32 1, %s504_s12   ;;  %p794_p13 = scmp.ne.s32.totalorder %s790_s25, 0 }
  0x52   : > { %p795_p4 = scmp.ge.s32.totalorder %s516_s15, 2  ;;  %s299_s16 = scalar_lea.sflag [#allocation4], %s298_s17 }
  0x54   : > { %p383_p5 = pnand %p795_p4, %p794_p13 }
  0x56   : > { %p384_p7 = pneg %p383_p5 }
  0x58   : > { %499 = dma.done.wait (%p384_p7), %s299_s16, 2048  }
  0x59   : > { %501 = vsyncadd (%p384_p7), %s299_s16, 4294965248  ;;  %p16_p8 = scmp.ge.s32.totalorder %s569_s18, 4   ;;  %s796_s12 = smov %s508_s13 }
  0x5a   : > { %s797_s13 = smov %s512_s14  ;;  %s798_s14 = smov %s581_s21 }
  0x5b   : > { %s799_s15 = smov %s569_s18  ;;  %18 = sbr.rel (!%p16_p8) target bundleno = 5 (0x5), region = 77 }
  0x60   :  { %304 = vsyncpa [#allocation3], 1 }
  0x61   :  { %306 = vsyncpa [#allocation3 + $0x1], 1 }
  0x62   :  { %307 = vsyncpa [#allocation4], 1 }
  0x63   :  { %309 = vsyncpa [#allocation4 + $0x1], 1 }

</bundles_post_ra>
